<compile_context>
chip_gen: v7x
topology: tpu7x:2x2x1
jax: 0.10.0
libtpu: 0.0.40
codegen_flags: <defaults>
</compile_context>

<pallas_src>
import functools

import jax
import jax.numpy as jnp
from jax.experimental import pallas as pl
from jax.experimental.pallas import tpu as pltpu


def nnlm_kernel(x_ref, w1_ref, b1_ref, w2_ref, out_ref,
                hid_ref, m_ref, l_ref, *, v_actual, tv):
    """Grid = (batch tiles, vocab tiles); vocab axis last ("arbitrary")."""
    j = pl.program_id(1)
    nv = pl.num_programs(1)

    # --- Once per batch tile: hidden = tanh(x @ W1 + b1); init LSE state. ---
    @pl.when(j == 0)
    def _():
        hid_ref[...] = jnp.tanh(
            jnp.dot(x_ref[...], w1_ref[...], preferred_element_type=jnp.float32)
            + b1_ref[...]
        )
        m_ref[...] = jnp.full_like(m_ref, -jnp.inf)
        l_ref[...] = jnp.zeros_like(l_ref)

    # --- Per vocab tile: logits tile on the MXU. ---
    logits = jnp.dot(hid_ref[...], w2_ref[...], preferred_element_type=jnp.float32)

    # Mask padded vocab columns (only emitted if V was padded).
    if v_actual % tv != 0:
        col = jax.lax.broadcasted_iota(jnp.int32, logits.shape, 1) + j * tv
        logits = jnp.where(col < v_actual, logits, jnp.float32(-1e30))

    # Online log-sum-exp update (running max m, running sum-of-exp l).
    m_prev = m_ref[...]
    m_new = jnp.maximum(m_prev, jnp.max(logits, axis=-1, keepdims=True))
    l_ref[...] = (l_ref[...] * jnp.exp(m_prev - m_new)
                  + jnp.sum(jnp.exp(logits - m_new), axis=-1, keepdims=True))
    m_ref[...] = m_new

    # Stash raw logits into the resident (TB, Vp) output slab (lane-dense).
    col0 = pl.multiple_of(j * tv, tv)
    out_ref[:, pl.ds(col0, tv)] = logits.astype(out_ref.dtype)

    # --- Finalize: log_softmax = logits - (m + log(sum exp)). ---
    @pl.when(j == nv - 1)
    def _():
        lse = m_ref[...] + jnp.log(l_ref[...])
        out_ref[...] = out_ref[...] - lse


def _round_up(x, m):
    return (x + m - 1) // m * m


def nnlm_forward(inputs, emb_table, w1, b1, w2, *, context_size, embedding_dim,
                 tb=None, tv=128):
    """inputs: int32 (B, context_size) token ids.

    w1: (C*E, H)  linear1 weight, stored transposed vs. PyTorch (in, out)
    b1: (H,)      linear1 bias
    w2: (H, V)    linear2 weight, stored transposed vs. PyTorch (in, out)
    returns: (B, V) float32 log-probabilities.
    """
    B = inputs.shape[0]
    K = context_size * embedding_dim
    H = w1.shape[1]
    V = w2.shape[1]

    # Embedding lookup (glue): gather rows, then flatten context dim.
    # TODO(synk): move this gather into the kernel (scalar-prefetch ids + DMA
    # gather) so the (B, C*E) activation never round-trips through HBM.
    embeds = jnp.take(emb_table, inputs.reshape(-1), axis=0)
    embeds = embeds.reshape(B, K).astype(jnp.float32)

    # Pad to MXU/lane-friendly shapes.
    Kp = _round_up(K, 128)
    Hp = _round_up(H, 128)
    Vp = _round_up(V, tv)
    if tb is None:
        tb = min(128, _round_up(B, 8))
    Bp = _round_up(B, tb)

    x_p = jnp.pad(embeds, ((0, Bp - B), (0, Kp - K)))
    w1_p = jnp.pad(w1, ((0, Kp - K), (0, Hp - H)))
    b1_p = jnp.pad(b1.reshape(1, -1).astype(jnp.float32), ((0, 0), (0, Hp - H)))
    w2_p = jnp.pad(w2, ((0, Hp - H), (0, Vp - V)))

    grid = (Bp // tb, Vp // tv)

    out = pl.pallas_call(
        functools.partial(nnlm_kernel, v_actual=V, tv=tv),
        out_shape=jax.ShapeDtypeStruct((Bp, Vp), jnp.float32),
        grid_spec=pltpu.PrefetchScalarGridSpec(
            num_scalar_prefetch=0,
            grid=grid,
            in_specs=[
                pl.BlockSpec((tb, Kp), lambda i, j: (i, 0)),   # x: per batch tile
                pl.BlockSpec((Kp, Hp), lambda i, j: (0, 0)),   # w1: resident
                pl.BlockSpec((1, Hp), lambda i, j: (0, 0)),    # b1: resident
                pl.BlockSpec((Hp, tv), lambda i, j: (0, j)),   # w2: streamed over V
            ],
            out_specs=pl.BlockSpec((tb, Vp), lambda i, j: (i, 0)),  # resident slab
            scratch_shapes=[
                pltpu.VMEM((tb, Hp), jnp.float32),  # hidden activations
                pltpu.VMEM((tb, 1), jnp.float32),   # running max
                pltpu.VMEM((tb, 1), jnp.float32),   # running sum-of-exp
            ],
        ),
        compiler_params=pltpu.CompilerParams(
            dimension_semantics=("parallel", "arbitrary"),
        ),
    )(x_p, w1_p, b1_p, w2_p)

    return out[:B, :V]


def reference_forward(inputs, emb_table, w1, b1, w2, *, context_size, embedding_dim):
    B = inputs.shape[0]
    embeds = jnp.take(emb_table, inputs.reshape(-1), axis=0)
    embeds = embeds.reshape(B, context_size * embedding_dim)
    h = jnp.tanh(embeds @ w1 + b1)
    logits = h @ w2
    return jax.nn.log_softmax(logits, axis=1)


if __name__ == "__main__":
    def run_case(vocab_size, embedding_dim, context_size, h, batch, tb=None):
        key = jax.random.PRNGKey(0)
        k_emb, k_w1, k_b1, k_w2, k_in = jax.random.split(key, 5)

        emb_table = jax.random.normal(k_emb, (vocab_size, embedding_dim), jnp.float32) * 0.1
        # Stored transposed vs. PyTorch nn.Linear: (in_features, out_features).
        w1 = jax.random.normal(k_w1, (context_size * embedding_dim, h), jnp.float32) * 0.1
        b1 = jax.random.normal(k_b1, (h,), jnp.float32) * 0.1
        w2 = jax.random.normal(k_w2, (h, vocab_size), jnp.float32) * 0.1
        inputs = jax.random.randint(k_in, (batch, context_size), 0, vocab_size, jnp.int32)

        log_probs = nnlm_forward(
            inputs, emb_table, w1, b1, w2,
            context_size=context_size, embedding_dim=embedding_dim, tb=tb,
        )
        log_probs = jax.block_until_ready(log_probs)

        ref = reference_forward(
            inputs, emb_table, w1, b1, w2,
            context_size=context_size, embedding_dim=embedding_dim,
        )
        assert log_probs.shape == (batch, vocab_size)
        assert jnp.allclose(log_probs, ref, atol=1e-4, rtol=1e-4), (
            f"mismatch vs reference (V={vocab_size}, B={batch})"
        )
        # log_softmax rows should sum (in prob space) to 1.
        assert jnp.allclose(jnp.sum(jnp.exp(log_probs), axis=1), 1.0, atol=1e-3)

    # Base small shapes from the module (2 vocab tiles -> exercises online LSE).
    run_case(vocab_size=256, embedding_dim=16, context_size=4, h=32, batch=8)
    # Multiple batch tiles + batch padding.
    run_case(vocab_size=256, embedding_dim=16, context_size=4, h=32, batch=40, tb=16)
    # Vocab not a multiple of the vocab tile (exercises padded-column masking).
    run_case(vocab_size=200, embedding_dim=16, context_size=4, h=32, batch=8)

    print("KERNEL_OK")
</pallas_src>

<mosaic_0001>
module attributes {stable_mosaic.version = 11 : i64} {
  func.func @nnlm_kernel(%arg0: i32, %arg1: i32, %arg2: memref<8x128xf32, #tpu.memory_space<vmem>>, %arg3: memref<128x128xf32, #tpu.memory_space<vmem>>, %arg4: memref<1x128xf32, #tpu.memory_space<vmem>>, %arg5: memref<128x128xf32, #tpu.memory_space<vmem>>, %arg6: memref<8x256xf32, #tpu.memory_space<vmem>>, %arg7: memref<8x128xf32, #tpu.memory_space<vmem>>, %arg8: memref<8x1xf32, #tpu.memory_space<vmem>>, %arg9: memref<8x1xf32, #tpu.memory_space<vmem>>) attributes {dimension_semantics = [#tpu.dimension_semantics<parallel>, #tpu.dimension_semantics<arbitrary>], iteration_bounds = array<i64: 1, 2>, scalar_prefetch = 0 : i64, scratch_operands = 3 : i64, tpu.core_type = #tpu.core_type<tc>, window_params = [{transform_indices = @transform_0, window_bounds = array<i64: 8, 128>}, {pipeline_mode = #tpu.pipeline_mode<synchronous>, transform_indices = @transform_1, window_bounds = array<i64: 128, 128>}, {pipeline_mode = #tpu.pipeline_mode<synchronous>, transform_indices = @transform_2, window_bounds = array<i64: 1, 128>}, {transform_indices = @transform_3, window_bounds = array<i64: 128, 128>}, {transform_indices = @transform_4, window_bounds = array<i64: 8, 256>}]} {
    %c0_i32 = arith.constant 0 : i32
    %0 = arith.cmpi eq, %arg1, %c0_i32 : i32
    %1 = arith.extui %0 : i1 to i32
    %c0_i32_0 = arith.constant 0 : i32
    %2 = arith.cmpi ne, %1, %c0_i32_0 : i32
    scf.if %2 {
      %c0_16 = arith.constant 0 : index
      %c0_17 = arith.constant 0 : index
      %29 = vector.load %arg2[%c0_16, %c0_17] : memref<8x128xf32, #tpu.memory_space<vmem>>, vector<8x128xf32>
      %c0_18 = arith.constant 0 : index
      %c0_19 = arith.constant 0 : index
      %30 = vector.load %arg3[%c0_18, %c0_19] : memref<128x128xf32, #tpu.memory_space<vmem>>, vector<128x128xf32>
      %cst_20 = arith.constant dense<0.000000e+00> : vector<8x128xf32>
      %31 = tpu.matmul %29, %30, %cst_20 {dimension_numbers = #tpu.dot_dimension_numbers<[1], [0], [0], [1], [0, 0, 1, 1], [], []>} : vector<8x128xf32>, vector<128x128xf32>, vector<8x128xf32> -> vector<8x128xf32>
      %c0_21 = arith.constant 0 : index
      %c0_22 = arith.constant 0 : index
      %32 = vector.load %arg4[%c0_21, %c0_22] : memref<1x128xf32, #tpu.memory_space<vmem>>, vector<1x128xf32>
      %33 = vector.broadcast %32 : vector<1x128xf32> to vector<8x128xf32>
      %34 = arith.addf %31, %33 : vector<8x128xf32>
      %35 = math.tanh %34 : vector<8x128xf32>
      %c0_23 = arith.constant 0 : index
      %c0_24 = arith.constant 0 : index
      %36 = vector.load %arg7[%c0_23, %c0_24] : memref<8x128xf32, #tpu.memory_space<vmem>>, vector<8x128xf32>
      tpu.vector_store %arg7[%c0_23, %c0_24], %35 {strides = array<i32>} : memref<8x128xf32, #tpu.memory_space<vmem>>, vector<8x128xf32>,
      %cst_25 = arith.constant 0xFF800000 : f32
      %37 = vector.broadcast %cst_25 : f32 to vector<8x1xf32>
      %c0_26 = arith.constant 0 : index
      %c0_27 = arith.constant 0 : index
      %38 = vector.load %arg8[%c0_26, %c0_27] : memref<8x1xf32, #tpu.memory_space<vmem>>, vector<8x1xf32>
      tpu.vector_store %arg8[%c0_26, %c0_27], %37 {strides = array<i32>} : memref<8x1xf32, #tpu.memory_space<vmem>>, vector<8x1xf32>,
      %cst_28 = arith.constant 0.000000e+00 : f32
      %39 = vector.broadcast %cst_28 : f32 to vector<8x1xf32>
      %c0_29 = arith.constant 0 : index
      %c0_30 = arith.constant 0 : index
      %40 = vector.load %arg9[%c0_29, %c0_30] : memref<8x1xf32, #tpu.memory_space<vmem>>, vector<8x1xf32>
      tpu.vector_store %arg9[%c0_29, %c0_30], %39 {strides = array<i32>} : memref<8x1xf32, #tpu.memory_space<vmem>>, vector<8x1xf32>,
    } else {
    }
    %c0 = arith.constant 0 : index
    %c0_1 = arith.constant 0 : index
    %3 = vector.load %arg7[%c0, %c0_1] : memref<8x128xf32, #tpu.memory_space<vmem>>, vector<8x128xf32>
    %c0_2 = arith.constant 0 : index
    %c0_3 = arith.constant 0 : index
    %4 = vector.load %arg5[%c0_2, %c0_3] : memref<128x128xf32, #tpu.memory_space<vmem>>, vector<128x128xf32>
    %cst = arith.constant dense<0.000000e+00> : vector<8x128xf32>
    %5 = tpu.matmul %3, %4, %cst {dimension_numbers = #tpu.dot_dimension_numbers<[1], [0], [0], [1], [0, 0, 1, 1], [], []>} : vector<8x128xf32>, vector<128x128xf32>, vector<8x128xf32> -> vector<8x128xf32>
    %c0_4 = arith.constant 0 : index
    %c0_5 = arith.constant 0 : index
    %6 = vector.load %arg8[%c0_4, %c0_5] : memref<8x1xf32, #tpu.memory_space<vmem>>, vector<8x1xf32>
    %cst_6 = arith.constant dense<0xFF800000> : vector<8xf32>
    %7 = vector.multi_reduction <maximumf>, %5, %cst_6 [1] : vector<8x128xf32> to vector<8xf32>
    %8 = vector.shape_cast %7 : vector<8xf32> to vector<8x1xf32>
    %9 = arith.maximumf %6, %8 : vector<8x1xf32>
    %c0_7 = arith.constant 0 : index
    %c0_8 = arith.constant 0 : index
    %10 = vector.load %arg9[%c0_7, %c0_8] : memref<8x1xf32, #tpu.memory_space<vmem>>, vector<8x1xf32>
    %11 = arith.subf %6, %9 : vector<8x1xf32>
    %12 = math.exp %11 : vector<8x1xf32>
    %13 = arith.mulf %10, %12 : vector<8x1xf32>
    %14 = vector.broadcast %9 : vector<8x1xf32> to vector<8x128xf32>
    %15 = arith.subf %5, %14 : vector<8x128xf32>
    %16 = math.exp %15 : vector<8x128xf32>
    %cst_9 = arith.constant dense<0.000000e+00> : vector<8xf32>
    %17 = vector.multi_reduction <add>, %16, %cst_9 [1] : vector<8x128xf32> to vector<8xf32>
    %18 = vector.shape_cast %17 : vector<8xf32> to vector<8x1xf32>
    %19 = arith.addf %13, %18 : vector<8x1xf32>
    %c0_10 = arith.constant 0 : index
    %c0_11 = arith.constant 0 : index
    %20 = vector.load %arg9[%c0_10, %c0_11] : memref<8x1xf32, #tpu.memory_space<vmem>>, vector<8x1xf32>
    tpu.vector_store %arg9[%c0_10, %c0_11], %19 {strides = array<i32>} : memref<8x1xf32, #tpu.memory_space<vmem>>, vector<8x1xf32>,
    %c0_12 = arith.constant 0 : index
    %c0_13 = arith.constant 0 : index
    %21 = vector.load %arg8[%c0_12, %c0_13] : memref<8x1xf32, #tpu.memory_space<vmem>>, vector<8x1xf32>
    tpu.vector_store %arg8[%c0_12, %c0_13], %9 {strides = array<i32>} : memref<8x1xf32, #tpu.memory_space<vmem>>, vector<8x1xf32>,
    %c128_i32 = arith.constant 128 : i32
    %22 = arith.muli %arg1, %c128_i32 : i32
    %23 = tpu.assume_multiple %22, 128 : i32
    %c0_14 = arith.constant 0 : index
    %24 = arith.index_cast %23 : i32 to index
    %25 = vector.load %arg6[%c0_14, %24] : memref<8x256xf32, #tpu.memory_space<vmem>>, vector<8x128xf32>
    tpu.vector_store %arg6[%c0_14, %24], %5 {strides = array<i32>} : memref<8x256xf32, #tpu.memory_space<vmem>>, vector<8x128xf32>,
    %c1_i32 = arith.constant 1 : i32
    %26 = arith.cmpi eq, %arg1, %c1_i32 : i32
    %27 = arith.extui %26 : i1 to i32
    %c0_i32_15 = arith.constant 0 : i32
    %28 = arith.cmpi ne, %27, %c0_i32_15 : i32
    scf.if %28 {
      %c0_16 = arith.constant 0 : index
      %c0_17 = arith.constant 0 : index
      %29 = vector.load %arg8[%c0_16, %c0_17] : memref<8x1xf32, #tpu.memory_space<vmem>>, vector<8x1xf32>
      %c0_18 = arith.constant 0 : index
      %c0_19 = arith.constant 0 : index
      %30 = vector.load %arg9[%c0_18, %c0_19] : memref<8x1xf32, #tpu.memory_space<vmem>>, vector<8x1xf32>
      %31 = math.log %30 : vector<8x1xf32>
      %32 = arith.addf %29, %31 : vector<8x1xf32>
      %c0_20 = arith.constant 0 : index
      %c0_21 = arith.constant 0 : index
      %33 = vector.load %arg6[%c0_20, %c0_21] : memref<8x256xf32, #tpu.memory_space<vmem>>, vector<8x256xf32>
      %34 = vector.broadcast %32 : vector<8x1xf32> to vector<8x256xf32>
      %35 = arith.subf %33, %34 : vector<8x256xf32>
      %c0_22 = arith.constant 0 : index
      %c0_23 = arith.constant 0 : index
      %36 = vector.load %arg6[%c0_22, %c0_23] : memref<8x256xf32, #tpu.memory_space<vmem>>, vector<8x256xf32>
      tpu.vector_store %arg6[%c0_22, %c0_23], %35 {strides = array<i32>} : memref<8x256xf32, #tpu.memory_space<vmem>>, vector<8x256xf32>,
    } else {
    }
    return
  }
  func.func @transform_0(%arg0: i32, %arg1: i32) -> (i32, i32) {
    %c0_i32 = arith.constant 0 : i32
    %c0_i32_0 = arith.constant 0 : i32
    return %arg0, %c0_i32 : i32, i32
  }
  func.func @transform_1(%arg0: i32, %arg1: i32) -> (i32, i32) {
    %c0_i32 = arith.constant 0 : i32
    %c0_i32_0 = arith.constant 0 : i32
    %c0_i32_1 = arith.constant 0 : i32
    return %c0_i32, %c0_i32_0 : i32, i32
  }
  func.func @transform_2(%arg0: i32, %arg1: i32) -> (i32, i32) {
    %c0_i32 = arith.constant 0 : i32
    %c0_i32_0 = arith.constant 0 : i32
    %c0_i32_1 = arith.constant 0 : i32
    return %c0_i32, %c0_i32_0 : i32, i32
  }
  func.func @transform_3(%arg0: i32, %arg1: i32) -> (i32, i32) {
    %c0_i32 = arith.constant 0 : i32
    %c0_i32_0 = arith.constant 0 : i32
    return %c0_i32, %arg1 : i32, i32
  }
  func.func @transform_4(%arg0: i32, %arg1: i32) -> (i32, i32) {
    %c0_i32 = arith.constant 0 : i32
    %c0_i32_0 = arith.constant 0 : i32
    return %arg0, %c0_i32 : i32, i32
  }
}

</mosaic_0001>

<bundles_post_ra>
// kernel: tpu_custom_call.1
= control target key start
LH: loop header
LB: loop body
LE: loop exit
PB: predicated region body
PF: predicated region fallthrough
CT: control target
= control target key end

     0   :  { %9 = vsyncpa [#allocation6], 0  ;;  %s1319_s0 = inlined_call_operand.hbm [shape: f32[8,128], index: 0, kind: input, shape index: {}]   ;;  %s1320_s1 = inlined_call_operand.hbm [shape: f32[128,128], index: 1, kind: input, shape index: {}]   ;;  %s1321_s2 = inlined_call_operand.vmem [shape: f32[1,128], index: 2, kind: input, shape index: {}]   ;;  %s1322_s3 = inlined_call_operand.hbm [shape: f32[128,256], index: 3, kind: input, shape index: {}]   ;;  %s1323_s4 = inlined_call_operand.hbm [shape: f32[8,256], index: 4, kind: output, shape index: {}]  }
   0x1   :  { %10 = vsyncpa [#allocation9], 0 }
   0x2   :  { %11 = vsyncpa [#allocation7], 0  ;;  %s1079_s15 = smov 0   ;;  %s1081_s16 = smov 0  }
   0x3   :  { %s1083_s17 = smov 0   ;;  %s1085_s18 = smov 0  }
   0x4   :  { %s1087_s19 = smov 0   ;;  %s1089_s20 = smov 0  }
   0x5 LB: > { %s1108_s21 = sadd.s32 4294967295, %s1036_s20   ;;  %s104_s22 = sadd.s32 1, %s1024_s17  ;;  %s1036_s20 = sphi %s1089_s20, %s17_s20   ;;  %s1032_s19 = sphi %s1087_s19, %s1343_s19   ;;  %s1028_s18 = sphi %s1085_s18, %s1342_s18   ;;  %s1024_s17 = sphi %s1083_s17, %s1341_s17   ;;  %s1020_s16 = sphi %s1081_s16, %s1340_s16   ;;  %s1016_s15 = sphi %s1079_s15, %s1339_s15  }
   0x6   : > { %p111_p0 = scmp.ne.s32.totalorder %s1024_s17, %s1020_s16  ;;  %p112_p1 = scmp.eq.s32.totalorder %s1036_s20, 0 }
   0x7   : > { %p117_p2 = scmp.ne.s32.totalorder %s1020_s16, %s1016_s15  ;;  %p1324_p3 = scmp.eq.s32.totalorder %s1108_s21, 0 }
   0x8   : > { %p113_p4 = por %p112_p1, %p111_p0  ;;  %p586_p5 = scmp.ge.s32.totalorder %s1036_s20, 1 }
   0x9   : > { %p1119_p6 = por %p1324_p3, %p117_p2  ;;  %p154_p7 = scmp.lt.s32.totalorder %s1036_s20, 3 }
   0xa   : > { %s1038_s25 = smov [#allocation5]   ;;  %p784_p10 = scmp.lt.s32.totalorder %s1036_s20, 2 }
   0xb   : > { %s1328_s23 = scalar_select %p1119_p6, 1, 0 }
   0xc   : > { %p1124_p8 = pnand %p586_p5, %p154_p7  ;;  %s169_s26 = sshll.u32 %s1038_s25, 4  ;;  %s170_s26 = int_to_ptr.vmem [resolvable:$true] %s169_s26 }
   0xd   : > { %p1137_p12 = pnand %p784_p10, %p113_p4  ;;  %s1039_s29 = smov [#allocation8]  }
   0xe   : > { %s1329_s24 = scalar_select %p1124_p8, 1, 0 }
   0xf   : > { %p771_p9 = pneg %p1124_p8  ;;  %s179_s30 = sshll.u32 %s1039_s29, 4  ;;  %s180_s30 = int_to_ptr.vmem [resolvable:$true] %s179_s30 }
  0x10   : > { %s1331_s28 = scalar_select %p1137_p12, 1, 0 }
  0x11   : > { %p1133_p11 = pnand %p771_p9, %p1324_p3  ;;  %s862_s7 = scalar_lea.hbm %s1319_s0, 128 }
  0x12   : > { %p863_p13 = scmp.ne.s32.totalorder %s1319_s0, %s862_s7  ;;  %p869_p4 = scmp.lt.u32.totalorder %s862_s7, %s1319_s0 }
  0x13   : > { %p864_p0 = pneg %p1133_p11 }
  0x15   : > { %p865_p1 = pnand %p864_p0, %p863_p13 }
  0x17   : > { %p866_p2 = pneg %p865_p1 }
  0x19   : > { %p871_p5 = pnand %p869_p4, %p866_p2 }
  0x1b   : > { %874 = shalt.err (!%p871_p5)
}
  0x1c   : > { %s875_s12 = scalar_lea.vmem %s170_s26, 128  ;;  %p883_p3 = scmp.lt.s32.totalorder %s170_s26, %s170_s26 }
  0x1d   : > { %p876_p7 = scmp.ne.s32.totalorder %s170_s26, %s875_s12  ;;  %p884_p6 = scmp.lt.s32.totalorder %s875_s12, %s875_s12 }
  0x1f   : > { %p878_p9 = pnand %p876_p7, %p864_p0  ;;  %p885_p8 = por %p884_p6, %p883_p3 }
  0x21   : > { %p879_p10 = pneg %p878_p9 }
  0x23   : > { %p886_p12 = pnand %p885_p8, %p879_p10 }
  0x25   : > { %889 = shalt.err (!%p886_p12)
}
  0x26   : > { %774 = dma.hbm_to_vmem [thread:$0]  (!%p1133_p11), %s1319_s0, 128, %s170_s26, [#allocation6]  }
  0x27   : > { %s890_s29 = scalar_lea.hbm %s1320_s1, 2048 }
  0x28   : > { %p891_p13 = scmp.ne.s32.totalorder %s1320_s1, %s890_s29  ;;  %p897_p8 = scmp.lt.u32.totalorder %s890_s29, %s1320_s1 }
  0x2a   : > { %p893_p3 = pnand %p891_p13, %p864_p0 }
  0x2c   : > { %p894_p6 = pneg %p893_p3 }
  0x2e   : > { %p899_p12 = pnand %p897_p8, %p894_p6 }
  0x30   : > { %902 = shalt.err (!%p899_p12)
}
  0x31   : > { %s903_s26 = scalar_lea.vmem %s180_s30, 2048  ;;  %p911_p5 = scmp.lt.s32.totalorder %s180_s30, %s180_s30 }
  0x32   : > { %p904_p1 = scmp.ne.s32.totalorder %s180_s30, %s903_s26  ;;  %p912_p7 = scmp.lt.s32.totalorder %s903_s26, %s903_s26 }
  0x34   : > { %p906_p2 = pnand %p904_p1, %p864_p0  ;;  %p913_p9 = por %p912_p7, %p911_p5 }
  0x36   : > { %p907_p4 = pneg %p906_p2 }
  0x38   : > { %p914_p10 = pnand %p913_p9, %p907_p4 }
  0x3a   : > { %917 = shalt.err (!%p914_p10)
}
  0x3b   : > { %s1040_s9 = smov 128   ;;  %s1041_s10 = smov 8  }
  0x3c   : > { %777 = dma.hbm_to_vmem [thread:$0]  (!%p1133_p11), %s1320_s1, 2048, %s180_s30, [#allocation9], %s1040_s9, %s1040_s9, %s1041_s10  }
  0x3d   : > { %s196_s13 = sand.u32 1, %s1036_s20   ;;  %s26_s14 = sadd.s32 1, %s1032_s19 }
  0x3e   : > { %p27_p0 = scmp.ge.s32.totalorder %s26_s14, 2  ;;  %s198_s15 = sand.u32 1, %s1024_s17  }
  0x3f   : > { %s590_s25 = sshll.u32 %s198_s15, 7  ;;  %s591_s29 = sshll.u32 %s1032_s19, 7 }
  0x40   : > { %s1345_s14 = smov (%p27_p0, %s26_s14), 0  ;;  %s1195_s27 = scalar_lea.hbm %s1322_s3, %s591_s29 }
  0x41   : > { %s101_s30 = ssub.s32 %s1032_s19, %s1345_s14  ;;  %s200_s7 = scalar_lea.vmem [#allocation10], %s590_s25 }
  0x42   : > { %s206_s8 = sshll.u32 %s200_s7, 4  ;;  %p102_p11 = scmp.eq.s32.totalorder %s101_s30, 0  ;;  %s1199_s8 = int_to_ptr.vmem [resolvable:$true] %s206_s8 }
  0x43   : > { %s1206_s11 = scalar_lea.sflag [#allocation6], %s196_s13  ;;  %s918_s12 = scalar_lea.hbm %s1195_s27, 2048 }
  0x44   : > { %s1204_s26 = scalar_select %p102_p11, %s1024_s17, %s104_s22  }
  0x45   : > { %p919_p13 = scmp.ne.s32.totalorder %s1195_s27, %s918_s12  ;;  %p1332_p3 = scmp.ne.s32.totalorder %s1331_s28, 0 }
  0x46   : > { %s923_s25 = scalar_lea.hbm %s1322_s3, 4096  ;;  %p924_p1 = scmp.lt.u32.totalorder %s1195_s27, %s1322_s3 }
  0x47   : > { %p920_p6 = pneg %p1332_p3  ;;  %p925_p2 = scmp.lt.u32.totalorder %s923_s25, %s918_s12 }
  0x48   : > { %p927_p5 = scmp.lt.u32.totalorder %s918_s12, %s1195_s27 }
  0x49   : > { %p921_p8 = pnand %p920_p6, %p919_p13  ;;  %p926_p4 = por %p925_p2, %p924_p1 }
  0x4b   : > { %p922_p12 = pneg %p921_p8  ;;  %p928_p7 = por %p927_p5, %p926_p4 }
  0x4d   : > { %p929_p9 = pnand %p928_p7, %p922_p12 }
  0x4f   : > { %932 = shalt.err (!%p929_p9)
}
  0x50   : > { %s933_s22 = scalar_lea.vmem %s1199_s8, 2048  ;;  %s1042_s13 = smov [#allocation10]  }
  0x51   : > { %p934_p10 = scmp.ne.s32.totalorder %s1199_s8, %s933_s22  ;;  %s938_s30 = sshll.u32 %s1042_s13, 4  ;;  %s939_s30 = int_to_ptr.vmem [resolvable:$false] %s938_s30 }
  0x52   : > { %s940_s7 = scalar_lea.vmem %s939_s30, 4096  ;;  %p941_p13 = scmp.lt.s32.totalorder %s1199_s8, %s939_s30 }
  0x53   : > { %p936_p0 = pnand %p934_p10, %p920_p6  ;;  %p942_p8 = scmp.lt.s32.totalorder %s940_s7, %s933_s22 }
  0x55   : > { %p937_p11 = pneg %p936_p0  ;;  %p943_p1 = por %p942_p8, %p941_p13 }
  0x57   : > { %p944_p2 = pnand %p943_p1, %p937_p11 }
  0x59   : > { %947 = shalt.err (!%p944_p2)
}
  0x5a   : > { %s1043_s12 = smov 256   ;;  %p1333_p6 = scmp.ne.s32.totalorder %s1329_s24, 0 }
  0x5b   : > { %781 = dma.hbm_to_vmem [thread:$0]  (!%p1332_p3), %s1195_s27, 2048, %s1199_s8, %s1206_s11, %s1043_s12, %s1040_s9, %s1041_s10  }
  0x5c   : > { %218 = sbr.rel (%p1333_p6) target bundleno = 1226 (0x4ca), region = 36  ;;  %p1334_p12 = scmp.eq.s32.totalorder (!%p1333_p6), %s1108_s21, 0 }
  0x63   : > { %999 = dma.done.wait (%p1334_p12), [#allocation6], 128   ;;  %p1335_p4 = pmov %p1334_p12 }
  0x65   : > { %1001 = vsyncadd (%p1335_p4), [#allocation6], 4294967168  ;;  %p1336_p5 = pmov %p1335_p4 }
  0x66   : > { %p1337_p7 = pmov %p1335_p4 }
  0x67   : > { %1003 = dma.done.wait (%p1336_p5), [#allocation9], 2048  }
  0x68   : > { %1005 = vsyncadd (%p1337_p7), [#allocation9], 4294965248  ;;  %s228_s28 = sand.u32 1, %s1108_s21   ;;  %s230_s9 = sand.u32 1, %s1020_s16  }
  0x69   : > { %s595_s10 = sshll.u32 %s230_s9, 7  ;;  %s229_s24 = scalar_lea.sflag [#allocation6], %s228_s28 }
  0x6a   : > { %s1248_s27 = scalar_lea.vmem [#allocation10], %s595_s10  ;;  %p1338_p3 = scmp.ne.s32.totalorder %s1328_s23, 0 }
  0x6c   : > { %1007 = dma.done.wait (%p1338_p3), %s229_s24, 2048  }
  0x6d   : > { %1009 = vsyncadd (%p1338_p3), %s229_s24, 4294965248  ;;  %p596_p9 = scmp.ne.s32.totalorder %s1028_s18, 0 }
  0x6e   : > { %v257_v0 = vld [vmem:[#allocation8] sm:$0xff] (!%p596_p9)  ;;  %v258_v1 = vld [vmem:[#allocation8 + $0x8] sm:$0xff] (!%p596_p9)  ;;  %v259_v2 = vld [vmem:[#allocation8 + $0x10] sm:$0xff] (!%p596_p9)  ;;  %v1044_v3 = vmov (!%p596_p9), 0.0|0.0   ;;  %vm1045_vm0 = vmmov (!%p596_p9), 0   ;;  %v1046_v6 = vmov (!%p596_p9), 0.0  }
  0x6f   : > { %255 = sbr.rel (%p596_p9) target bundleno = 370 (0x172), region = 52  ;;  %709 = vmatprep.subr.bf16.mxu0 (!%p596_p9), %v1044_v3  ;;  %v710_v4 = vpack.c.bf16 (!%p596_p9), %v258_v1, %v257_v0  ;;  %v260_v5 = vld [vmem:[#allocation8 + $0x18] sm:$0xff] (!%p596_p9)  ;;  %671 = vmatprep.mubr.msk.f32.mxu0 (!%p596_p9), %vm1045_vm0, %v1046_v6  ;;  %vm352_vm1 = vcmask (!%p596_p9), 7168   ;;  %v1047_v7 = vmov (!%p596_p9), -inf   ;;  %v261_v9 = vld [vmem:[#allocation8 + $0x20] sm:$0xff] (!%p596_p9)  ;;  %v262_v10 = vld [vmem:[#allocation8 + $0x28] sm:$0xff] (!%p596_p9) }
  0x70   : > { %353 = vst.msk [vmem:[#allocation3] sm:$0xff] (!%p596_p9), %vm352_vm1, %v1047_v7  ;;  %354 = vst.msk [vmem:[#allocation4] sm:$0xff] (!%p596_p9), %vm352_vm1, %v1046_v6  ;;  %v713_v8 = vpack.c.bf16 (!%p596_p9), %v260_v5, %v259_v2  ;;  %v716_v11 = vpack.c.bf16 (!%p596_p9), %v262_v10, %v261_v9  ;;  %v263_v12 = vld [vmem:[#allocation8 + $0x30] sm:$0xff] (!%p596_p9)  ;;  %v264_v13 = vld [vmem:[#allocation8 + $0x38] sm:$0xff] (!%p596_p9) }
  0x71   : > { %711 = vmatpush3.bf16.msra.mxu0 (!%p596_p9), %v710_v4  ;;  %v719_v14 = vpack.c.bf16 (!%p596_p9), %v264_v13, %v263_v12  ;;  %v265_v15 = vld [vmem:[#allocation8 + $0x40] sm:$0xff] (!%p596_p9)  ;;  %v266_v16 = vld [vmem:[#allocation8 + $0x48] sm:$0xff] (!%p596_p9)  ;;  %v267_v18 = vld [vmem:[#allocation8 + $0x50] sm:$0xff] (!%p596_p9) }
  0x72   : > { %712 = vmatprep.subr.bf16.mxu0 (!%p596_p9), %v1044_v3  ;;  %v722_v17 = vpack.c.bf16 (!%p596_p9), %v266_v16, %v265_v15  ;;  %v268_v19 = vld [vmem:[#allocation8 + $0x58] sm:$0xff] (!%p596_p9)  ;;  %v269_v21 = vld [vmem:[#allocation8 + $0x60] sm:$0xff] (!%p596_p9)  ;;  %v270_v22 = vld [vmem:[#allocation8 + $0x68] sm:$0xff] (!%p596_p9) }
  0x73   : > { %v725_v20 = vpack.c.bf16 (!%p596_p9), %v268_v19, %v267_v18  ;;  %v728_v23 = vpack.c.bf16 (!%p596_p9), %v270_v22, %v269_v21  ;;  %v271_v24 = vld [vmem:[#allocation8 + $0x70] sm:$0xff] (!%p596_p9)  ;;  %v272_v25 = vld [vmem:[#allocation8 + $0x78] sm:$0xff] (!%p596_p9)  ;;  %v597_v28 = vld [vmem:[%s1321_s2] ss:$0 sm:$0xff] (!%p596_p9) }
  0x74   : > { %v731_v26 = vpack.c.bf16 (!%p596_p9), %v272_v25, %v271_v24  ;;  %v256_v27 = vld [vmem:[#allocation5] sm:$0xff] (!%p596_p9) }
  0x75   : > { %714 = vmatpush3.bf16.msra.mxu0 (!%p596_p9), %v713_v8 }
  0x76   : > { %715 = vmatprep.subr.bf16.mxu0 %v1044_v3 }
  0x79   : > { %717 = vmatpush3.bf16.msra.mxu0 %v716_v11 }
  0x7a   : > { %718 = vmatprep.subr.bf16.mxu0 %v1044_v3 }
  0x7d   : > { %720 = vmatpush3.bf16.msra.mxu0 %v719_v14 }
  0x7e   : > { %721 = vmatprep.subr.bf16.mxu0 %v1044_v3 }
  0x81   : > { %723 = vmatpush3.bf16.msra.mxu0 %v722_v17 }
  0x82   : > { %724 = vmatprep.subr.bf16.mxu0 %v1044_v3 }
  0x85   : > { %726 = vmatpush3.bf16.msra.mxu0 %v725_v20 }
  0x86   : > { %727 = vmatprep.subr.bf16.mxu0 %v1044_v3 }
  0x89   : > { %729 = vmatpush3.bf16.msra.mxu0 %v728_v23 }
  0x8a   : > { %730 = vmatprep.subr.bf16.mxu0 %v1044_v3 }
  0x8d   : > { %732 = vmatpush3.bf16.msra.mxu0 %v731_v26 }
  0x90   : > { %672 = vmatmul.mubr.f32.vlgmr.msra.gmra.mrb[0].mxu0 %v256_v27 }
 0x163   : > { %v346_v29 = vpop.f32.mrb[0].mxu0 }
 0x164   : > { %v347_v30 = vadd.f32 %v597_v28, %v346_v29  ;;  %v673_v31 = vpop.f32.mrb[1].mxu0 }
 0x166   : > { %852 = vtanh.f32 %v347_v30 }
 0x170   : > { %v853_v32 = vpop.eup %852 }
 0x171   : > { %351 = vst [vmem:[#allocation2] sm:$0xff] %v853_v32 }
 0x172 PF: > { %v356_v33 = vld [vmem:[%s1248_s27] sm:$0xff]  ;;  %v357_v34 = vld [vmem:[%s1248_s27 + $0x8] sm:$0xff]  ;;  %v358_v35 = vld [vmem:[%s1248_s27 + $0x10] sm:$0xff]  ;;  %v1048_v36 = vmov 0.0|0.0   ;;  %vm1049_vm2 = vmmov 0   ;;  %v1050_v39 = vmov 0.0  }
 0x173   : > { %733 = vmatprep.subr.bf16.mxu0 %v1048_v36  ;;  %v734_v37 = vpack.c.bf16 %v357_v34, %v356_v33  ;;  %v359_v38 = vld [vmem:[%s1248_s27 + $0x18] sm:$0xff]  ;;  %706 = vmatprep.mubr.msk.f32.mxu0 %vm1049_vm2, %v1050_v39  ;;  %v360_v41 = vld [vmem:[%s1248_s27 + $0x20] sm:$0xff]  ;;  %v361_v42 = vld [vmem:[%s1248_s27 + $0x28] sm:$0xff]  ;;  %s598_s11 = sshll.u32 %s1028_s18, 7  ;;  %v1051_v62 = vmov 0   ;;  %vm462_vm3 = vcmask 7168  }
 0x174   : > { %v737_v40 = vpack.c.bf16 %v359_v38, %v358_v35  ;;  %v740_v43 = vpack.c.bf16 %v361_v42, %v360_v41  ;;  %v362_v44 = vld [vmem:[%s1248_s27 + $0x30] sm:$0xff]  ;;  %v363_v45 = vld [vmem:[%s1248_s27 + $0x38] sm:$0xff]  ;;  %v364_v47 = vld [vmem:[%s1248_s27 + $0x40] sm:$0xff]  ;;  %s466_s15 = sshra.s32 %s598_s11, 7  ;;  %854 = vset.pattern.permute.xlu0 %v1051_v62  ;;  %p600_p10 = scmp.ne.s32.totalorder %s1028_s18, 1 }
 0x175   : > { %735 = vmatpush3.bf16.msra.mxu0 %v734_v37  ;;  %v743_v46 = vpack.c.bf16 %v363_v45, %v362_v44  ;;  %v365_v48 = vld [vmem:[%s1248_s27 + $0x48] sm:$0xff]  ;;  %v366_v50 = vld [vmem:[%s1248_s27 + $0x50] sm:$0xff]  ;;  %v367_v51 = vld [vmem:[%s1248_s27 + $0x58] sm:$0xff]  ;;  %s599_s29 = sshll.u32 %s466_s15, 3  ;;  %v1052_v14 = vmov (!%p600_p10), 0  }
 0x176   : > { %736 = vmatprep.subr.bf16.mxu0 %v1048_v36  ;;  %v746_v49 = vpack.c.bf16 %v365_v48, %v364_v47  ;;  %v749_v52 = vpack.c.bf16 %v367_v51, %v366_v50  ;;  %v368_v53 = vld [vmem:[%s1248_s27 + $0x60] sm:$0xff]  ;;  %v369_v54 = vld [vmem:[%s1248_s27 + $0x68] sm:$0xff]  ;;  %v370_v56 = vld [vmem:[%s1248_s27 + $0x70] sm:$0xff]  ;;  %s469_s25 = scalar_lea.vmem [#allocation11], %s599_s29 }
 0x177   : > { %v752_v55 = vpack.c.bf16 %v369_v54, %v368_v53  ;;  %v371_v57 = vld [vmem:[%s1248_s27 + $0x78] sm:$0xff]  ;;  %v442_v63 = vld [vmem:[#allocation3] sm:$0xff]  ;;  %v446_v9 = vld [vmem:[#allocation4] sm:$0xff] }
 0x178   : > { %v755_v58 = vpack.c.bf16 %v371_v57, %v370_v56  ;;  %v355_v59 = vld [vmem:[#allocation2] sm:$0xff] }
 0x179   : > { %738 = vmatpush3.bf16.msra.mxu0 %v737_v40 }
 0x17a   : > { %739 = vmatprep.subr.bf16.mxu0 %v1048_v36 }
 0x17d   : > { %741 = vmatpush3.bf16.msra.mxu0 %v740_v43 }
 0x17e   : > { %742 = vmatprep.subr.bf16.mxu0 %v1048_v36 }
 0x181   : > { %744 = vmatpush3.bf16.msra.mxu0 %v743_v46 }
 0x182   : > { %745 = vmatprep.subr.bf16.mxu0 %v1048_v36 }
 0x185   : > { %747 = vmatpush3.bf16.msra.mxu0 %v746_v49 }
 0x186   : > { %748 = vmatprep.subr.bf16.mxu0 %v1048_v36 }
 0x189   : > { %750 = vmatpush3.bf16.msra.mxu0 %v749_v52 }
 0x18a   : > { %751 = vmatprep.subr.bf16.mxu0 %v1048_v36 }
 0x18d   : > { %753 = vmatpush3.bf16.msra.mxu0 %v752_v55 }
 0x18e   : > { %754 = vmatprep.subr.bf16.mxu0 %v1048_v36 }
 0x191   : > { %756 = vmatpush3.bf16.msra.mxu0 %v755_v58 }
 0x194   : > { %707 = vmatmul.mubr.f32.vlgmr.msra.gmra.mrb[0].mxu0 %v355_v59 }
 0x267   : > { %v438_v60 = vpop.f32.mrb[0].mxu0 }
 0x268   : > { %470 = vst [vmem:[%s469_s25] sm:$0xff] %v438_v60  ;;  %443 = vmax.xlane.f32.xlu0 %v438_v60  ;;  %v708_v61 = vpop.f32.mrb[1].mxu0 }
 0x26f   : > { %v480_v19 = vld [vmem:[#allocation11] sm:$0xff] (!%p600_p10)  ;;  %v481_v20 = vld [vmem:[#allocation11 + $0x8] sm:$0xff] (!%p600_p10) }
 0x2f5   : > { %v444_v0 = vpop.xlane.xlu0 %443 }
 0x2f6   : > { %v445_v1 = vmax.f32 %v442_v63, %v444_v0 }
 0x2f8   : > { %v447_v2 = vsub.f32 %v442_v63, %v445_v1  ;;  %464 = vst.msk [vmem:[#allocation3] sm:$0xff] %vm462_vm3, %v445_v1  ;;  %453 = vperm.xlu0 %854, %v445_v1  }
 0x2fa   : > { %v448_v7 = vmul.f32 1.442695, %v447_v2 }
 0x2fc   : > { %859 = vset.pattern.permute.xlu0 (!%p600_p10), %v1052_v14 }
 0x2ff   : > { %v475_v16 = vld [vmem:[#allocation3] sm:$0xff] (!%p600_p10) }
 0x377   : > { %v454_v3 = vpop.permute.xlu0 %453 }
 0x378   : > { %v456_v4 = vsub.f32 %v438_v60, %v454_v3 }
 0x37a   : > { %v457_v5 = vmul.f32 1.442695, %v456_v4 }
 0x37c   : > { %855 = vpow2.f32 %v457_v5 }
 0x37d   : > { %857 = vpow2.f32 %v448_v7 }
 0x386   : > { %v856_v6 = vpop.eup %855 }
 0x387   : > { %459 = vadd.xlane.f32.xlu1 %v856_v6  ;;  %v858_v8 = vpop.eup %857 }
 0x388   : > { %v450_v10 = vmul.f32 %v858_v8, %v446_v9 }
 0x411   : > { %474 = sbr.rel (%p600_p10) target bundleno = 1201 (0x4b1), region = 56 }
 0x414   : > { %v460_v11 = vpop.xlane.xlu1 %459 }
 0x415   : > { %v461_v12 = vadd.f32 %v460_v11, %v450_v10 }
 0x417   : > { %463 = vst.msk [vmem:[#allocation4] sm:$0xff] %vm462_vm3, %v461_v12 }
 0x41e   : > { %v476_v13 = vld [vmem:[#allocation4] sm:$0xff] }
 0x41f   : > { %860 = vlog2.f32 %v476_v13 }
 0x429   : > { %v861_v15 = vpop.eup %860 }
 0x42a   : > { %v478_v17 = vmul.f32 0.6931472, %v861_v15 }
 0x42c   : > { %v479_v18 = vadd.f32 %v478_v17, %v475_v16 }
 0x42e   : > { %484 = vperm.xlu0 %859, %v479_v18  }
 0x4ad   : > { %v485_v21 = vpop.permute.xlu0 %484 }
 0x4ae   : > { %v487_v22 = vsub.f32 %v480_v19, %v485_v21  ;;  %v488_v23 = vsub.f32 %v481_v20, %v485_v21 }
 0x4b0   : > { %489 = vst [vmem:[#allocation11] sm:$0xff] %v487_v22  ;;  %490 = vst [vmem:[#allocation11 + $0x8] sm:$0xff] %v488_v23 }
 0x4b1 PF: > { %p787_p0 = scmp.eq.s32.totalorder %s1108_s21, 1  ;;  %s1053_s18 = smov [#allocation11]  }
 0x4b2   : > { %s501_s5 = sshll.u32 %s1053_s18, 4  ;;  %s502_s5 = int_to_ptr.vmem [resolvable:$true] %s501_s5 }
 0x4b3   : > { %s948_s6 = scalar_lea.vmem %s502_s5, 256  ;;  %p955_p1 = scmp.lt.s32.totalorder %s502_s5, %s502_s5 }
 0x4b4   : > { %p949_p11 = scmp.ne.s32.totalorder %s502_s5, %s948_s6  ;;  %p956_p2 = scmp.lt.s32.totalorder %s948_s6, %s948_s6 }
 0x4b6   : > { %p950_p13 = pnand %p949_p11, %p787_p0  ;;  %p957_p6 = por %p956_p2, %p955_p1 }
 0x4b8   : > { %p951_p8 = pneg %p950_p13 }
 0x4ba   : > { %p958_p12 = pnand %p957_p6, %p951_p8 }
 0x4bc   : > { %961 = shalt.err (!%p958_p12)
}
 0x4bd   : > { %s962_s30 = scalar_lea.hbm %s1323_s4, 256 }
 0x4be   : > { %p963_p4 = scmp.ne.s32.totalorder %s1323_s4, %s962_s30  ;;  %p968_p3 = scmp.lt.u32.totalorder %s962_s30, %s1323_s4 }
 0x4c0   : > { %p964_p5 = pnand %p963_p4, %p787_p0 }
 0x4c2   : > { %p965_p7 = pneg %p964_p5 }
 0x4c4   : > { %p970_p9 = pnand %p968_p3, %p965_p7 }
 0x4c6   : > { %973 = shalt.err (!%p970_p9)
}
 0x4c7   : > { %768 = dma.vmem_to_hbm [thread:$0]  (%p787_p0), %s502_s5, 256, %s1323_s4, [#allocation7]  }
 0x4c8   : > { %1011 = dma.done.wait (%p787_p0), [#allocation7], 256  }
 0x4c9   : > { %1013 = vsyncadd (%p787_p0), [#allocation7], 4294967040 }
 0x4ca PF: > { %s17_s20 = sadd.s32 1, %s1036_s20   ;;  %s1339_s15 = smov %s1020_s16 }
 0x4cb   : > { %p14_p10 = scmp.ge.s32.totalorder %s17_s20, 4   ;;  %s1340_s16 = smov %s1024_s17 }
 0x4cc   : > { %s1341_s17 = smov %s1204_s26  ;;  %s1342_s18 = smov %s1032_s19 }
 0x4cd   : > { %s1343_s19 = smov %s1345_s14  ;;  %16 = sbr.rel (!%p14_p10) target bundleno = 5 (0x5), region = 91 }
 0x4d4   :  { %514 = vsyncpa [#allocation6], 1 }
 0x4d5   :  { %516 = vsyncpa [#allocation6 + $0x1], 1 }
 0x4d6   :  { %517 = vsyncpa [#allocation9], 1 }
 0x4d7   :  { %518 = vsyncpa [#allocation7], 1 }
 0x4d8   :  { %520 = vsyncpa [#allocation7 + $0x1], 1 }

</bundles_post_ra>
